<compile_context>
chip_gen: v7x
topology: tpu7x:2x2x1
jax: 0.10.0
libtpu: 0.0.40
codegen_flags: <defaults>
</compile_context>

<pallas_src>
import jax
import jax.numpy as jnp
from jax.experimental import pallas as pl
from jax.experimental.pallas import tpu as pltpu


# ----------------------------------------------------------------------------
# Parameter construction (matches the PyTorch module's __init__ semantics).
# ----------------------------------------------------------------------------
def generate_kernel_size(input_size, N):
    c, d = input_size[0], input_size[1]
    sizes = [(1, c, 2, 2)]
    for _ in range(2, N):
        sizes.append((1, 1, 2, 2))
    sizes.append((1, 1, int(d / 2 ** (N - 1)), int(d / 2 ** (N - 1))))
    return sizes


def sample_unit_kernel(key, size):
    # torch.rand -> U[0,1); normalized by the sum (as in the reference code).
    k = jax.random.uniform(key, size, dtype=jnp.float32)
    return k / jnp.sum(k)


# ----------------------------------------------------------------------------
# Collapse the linear conv chain into one effective filter W_eff (C, D, D).
#   - A 2x2 / stride-2 conv followed by a linear functional V on its output is
#     the functional kron(V, w) on its input (stride == kernel size).
#   - Layer 0 additionally mixes channels: W_eff[c] = kron(V, w0[c]).
# Exact algebra, done once on the tiny weights in f32.
# ----------------------------------------------------------------------------
def effective_filter(kernels, C, D):
    V = kernels[-1][0, 0].astype(jnp.float32)              # (K, K) full-window conv
    for w in reversed(kernels[1:-1]):                       # middle 2x2 / stride-2 layers
        V = jnp.kron(V, w[0, 0].astype(jnp.float32))
    w0 = kernels[0][0].astype(jnp.float32)                  # (C, 2, 2) channel-mixing layer
    W = jnp.stack([jnp.kron(V, w0[c]) for c in range(C)], axis=0)   # (C, D, D)
    assert W.shape == (C, D, D), W.shape
    return W


# ----------------------------------------------------------------------------
# Pallas kernel: MXU mat-vec of a TB-row batch tile against W_eff.
# ----------------------------------------------------------------------------
def _slicer_kernel(x_ref, w_ref, o_ref):
    # x_ref: (TB, cdd) in x's native dtype; w_ref: (cdd, 1) f32; o_ref: (TB, 1) f32.
    # In-kernel upcast happens in vregs and is hidden under the tile DMA.
    # MXU mat-vec: no (TB, cdd) elementwise-product temp, no XLU lane reduce.
    # (For bit-exact f32 accumulation, precision=jax.lax.Precision.HIGHEST can
    #  be passed here; default keeps maximum lowering compatibility.)
    x = x_ref[...].astype(jnp.float32)
    o_ref[...] = jnp.dot(x, w_ref[...], preferred_element_type=jnp.float32)


# ----------------------------------------------------------------------------
# Tiling helpers.
# ----------------------------------------------------------------------------
def _sublane_multiple(dtype):
    # (8,128) block rule, adjusted for sub-32-bit sublane packing:
    # f32 -> 8, bf16 -> 16, int8/fp8 -> 32.
    return max(8, 32 // jnp.dtype(dtype).itemsize)


def _pick_batch_tile(B, row_bytes, sub):
    # x tile budget: 8 MiB. Double-buffered by the pipeline -> ~16 MiB of the
    # 32 MiB scoped VMEM limit; safe on v5e / v6e / v7x (no product temp now).
    budget = 8 * 1024 * 1024
    cap = max(sub, (budget // max(row_bytes, 1)) // sub * sub)
    # Force >= 2 (target 4) grid steps when the batch allows: a 1-step grid
    # gets no DMA/compute overlap and no v7x dual-TensorCore sharding.
    if B >= 4 * sub:
        steps = 4
    elif B >= 2 * sub:
        steps = 2
    else:
        steps = 1
    if steps > 1:
        cap = min(cap, max(sub, (B // steps) // sub * sub))
    tb = min(cap, -(-B // sub) * sub)          # round B up to the sublane mult
    # Prefer a tile that divides B exactly (no padded tail tile), but never
    # shrink the tile by more than 2x to find one.
    for t in range(tb, max(sub, tb // 2) - 1, -sub):
        if B % t == 0:
            return t
    return tb                                   # tail handled by zero-padding


# ----------------------------------------------------------------------------
# Wrapper: pallas_call with grid over batch tiles.
# ----------------------------------------------------------------------------
def conv_stride_slicer(x, kernels):
    B, C, D, D2 = x.shape
    N = len(kernels)
    assert D == D2, "square spatial input expected"
    assert D % (2 ** (N - 1)) == 0, "D must be divisible by 2**(N-1)"
    K = D // (2 ** (N - 1))
    # Preconditions of the Kronecker collapse (stride == kernel size, no pad/bias).
    assert tuple(kernels[0].shape) == (1, C, 2, 2), kernels[0].shape
    for w in kernels[1:-1]:
        assert tuple(w.shape) == (1, 1, 2, 2), w.shape
    assert tuple(kernels[-1].shape) == (1, 1, K, K), kernels[-1].shape

    cdd = C * D * D
    w_eff = effective_filter(kernels, C, D).reshape(cdd, 1)   # (cdd, 1) f32

    x2 = x.reshape(B, cdd)                     # native dtype; upcast in-kernel
    itemsize = jnp.dtype(x2.dtype).itemsize
    sub = _sublane_multiple(x2.dtype)
    tb = _pick_batch_tile(B, cdd * itemsize, sub)
    num_tiles = -(-B // tb)                    # ceil
    b_pad = num_tiles * tb
    if b_pad != B:
        # Zero rows contribute nothing to the dot; their outputs are dropped.
        x2 = jnp.pad(x2, ((0, b_pad - B), (0, 0)))

    cost = pl.CostEstimate(
        flops=2 * b_pad * cdd,
        transcendentals=0,
        bytes_accessed=b_pad * cdd * itemsize + cdd * 4 + b_pad * 4,
    )

    out = pl.pallas_call(
        _slicer_kernel,
        out_shape=jax.ShapeDtypeStruct((b_pad, 1), jnp.float32),
        grid=(num_tiles,),
        in_specs=[
            pl.BlockSpec((tb, cdd), lambda g: (g, 0)),   # TB batch rows of x
            pl.BlockSpec((cdd, 1), lambda g: (0, 0)),    # W_eff, resident block
        ],
        out_specs=pl.BlockSpec((tb, 1), lambda g: (g, 0)),
        compiler_params=pltpu.CompilerParams(
            dimension_semantics=("parallel",),           # batch tiles shard across v7x TCs
            vmem_limit_bytes=32 * 1024 * 1024,           # safe on v5e/v6e/v7x
        ),
        cost_estimate=cost,
    )(x2, w_eff)

    if b_pad != B:
        out = out[:B]
    return out.reshape(B, 1, 1, 1)


# ----------------------------------------------------------------------------
# Pure-JAX reference (same semantics as the PyTorch forward), for validation.
# ----------------------------------------------------------------------------
def reference_forward(x, kernels):
    dn = ('NCHW', 'OIHW', 'NCHW')
    for w in kernels[:-1]:
        x = jax.lax.conv_general_dilated(
            x, w, window_strides=(2, 2), padding='VALID', dimension_numbers=dn)
    x = jax.lax.conv_general_dilated(
        x, kernels[-1], window_strides=(1, 1), padding='VALID',
        dimension_numbers=dn)
    return x


if __name__ == "__main__":
    # Small shapes consistent with the module: (c, d, d) input, N kernels.
    input_size = (4, 16, 16)   # (c, d1, d2)
    N = 3                      # -> kernels (1,4,2,2), (1,1,2,2), (1,1,4,4)
    B = 2

    key = jax.random.PRNGKey(0)
    keys = jax.random.split(key, N + 1)

    sizes = generate_kernel_size(input_size, N)
    kernels = [sample_unit_kernel(keys[i], s) for i, s in enumerate(sizes)]
    x = jax.random.uniform(keys[N], (B,) + input_size, dtype=jnp.float32)

    out = conv_stride_slicer(x, kernels)
    out = jax.block_until_ready(out)

    ref = reference_forward(x, kernels)
    assert out.shape == (B, 1, 1, 1), out.shape

    # 1) Tight check of the Kronecker-collapse algebra (exact f32 matvec).
    C, D = input_size[0], input_size[1]
    w_flat = effective_filter(kernels, C, D).reshape(-1, 1)
    dense = jnp.matmul(x.reshape(B, -1).astype(jnp.float32), w_flat,
                       precision=jax.lax.Precision.HIGHEST).reshape(B, 1, 1, 1)
    assert jnp.allclose(dense, ref, atol=1e-5, rtol=1e-5), (dense, ref)

    # 2) Kernel check: tolerance also covers the MXU's default f32 contraction
    #    (possible bf16-pass rounding); the algebra itself is checked tightly above.
    assert jnp.allclose(out, ref, atol=5e-3, rtol=5e-3), (out, ref)

    print("KERNEL_OK")
</pallas_src>

<mosaic_0001>
module attributes {stable_mosaic.version = 11 : i64} {
  func.func @_slicer_kernel(%arg0: i32, %arg1: memref<8x1024xf32, #tpu.memory_space<vmem>>, %arg2: memref<1024x1xf32, #tpu.memory_space<vmem>>, %arg3: memref<8x1xf32, #tpu.memory_space<vmem>>) attributes {dimension_semantics = [#tpu.dimension_semantics<parallel>], iteration_bounds = array<i64: 1>, scalar_prefetch = 0 : i64, scratch_operands = 0 : i64, tpu.core_type = #tpu.core_type<tc>, window_params = [{transform_indices = @transform_0, window_bounds = array<i64: 8, 1024>}, {pipeline_mode = #tpu.pipeline_mode<synchronous>, transform_indices = @transform_1, window_bounds = array<i64: 1024, 1>}, {transform_indices = @transform_2, window_bounds = array<i64: 8, 1>}]} {
    %c0 = arith.constant 0 : index
    %c0_0 = arith.constant 0 : index
    %0 = vector.load %arg1[%c0, %c0_0] : memref<8x1024xf32, #tpu.memory_space<vmem>>, vector<8x1024xf32>
    %c0_1 = arith.constant 0 : index
    %c0_2 = arith.constant 0 : index
    %1 = vector.load %arg2[%c0_1, %c0_2] : memref<1024x1xf32, #tpu.memory_space<vmem>>, vector<1024x1xf32>
    %cst = arith.constant dense<0.000000e+00> : vector<8x1xf32>
    %2 = tpu.matmul %0, %1, %cst {dimension_numbers = #tpu.dot_dimension_numbers<[1], [0], [0], [1], [0, 0, 1, 1], [], []>} : vector<8x1024xf32>, vector<1024x1xf32>, vector<8x1xf32> -> vector<8x1xf32>
    %c0_3 = arith.constant 0 : index
    %c0_4 = arith.constant 0 : index
    %3 = vector.load %arg3[%c0_3, %c0_4] : memref<8x1xf32, #tpu.memory_space<vmem>>, vector<8x1xf32>
    tpu.vector_store %arg3[%c0_3, %c0_4], %2 {strides = array<i32>} : memref<8x1xf32, #tpu.memory_space<vmem>>, vector<8x1xf32>,
    return
  }
  func.func @transform_0(%arg0: i32) -> (i32, i32) {
    %c0_i32 = arith.constant 0 : i32
    %c0_i32_0 = arith.constant 0 : i32
    return %arg0, %c0_i32 : i32, i32
  }
  func.func @transform_1(%arg0: i32) -> (i32, i32) {
    %c0_i32 = arith.constant 0 : i32
    %c0_i32_0 = arith.constant 0 : i32
    %c0_i32_1 = arith.constant 0 : i32
    return %c0_i32, %c0_i32_0 : i32, i32
  }
  func.func @transform_2(%arg0: i32) -> (i32, i32) {
    %c0_i32 = arith.constant 0 : i32
    %c0_i32_0 = arith.constant 0 : i32
    return %arg0, %c0_i32 : i32, i32
  }
}

</mosaic_0001>

<bundles_post_ra>
// kernel: tpu_custom_call.1
= control target key start
LH: loop header
LB: loop body
LE: loop exit
PB: predicated region body
PF: predicated region fallthrough
CT: control target
= control target key end

     0   :  { %vm427_vm0 = vcmask 7168   ;;  %s1127_s1 = inlined_call_operand.vmem [shape: f32[1024,1], index: 1, kind: input, shape index: {}]   ;;  %s1128_s0 = inlined_call_operand.vmem [shape: f32[8,1024], index: 0, kind: input, shape index: {}]   ;;  %s1129_s2 = inlined_call_operand.vmem [shape: f32[8,1], index: 2, kind: output, shape index: {}]  }
   0x1   :  { %v35_v0 = vld [vmem:[%s1127_s1 + $0x80] sm:$0xff]  ;;  %v36_v1 = vld [vmem:[%s1127_s1 + $0x88] sm:$0xff]  ;;  %v37_v11 = vld [vmem:[%s1127_s1 + $0x90] sm:$0xff] }
   0x2   :  { %v67_v2 = vld [vmem:[%s1127_s1 + $0x180] sm:$0xff]  ;;  %v573_v3 = vpack.c.bf16 %v36_v1, %v35_v0  ;;  %v68_v4 = vld [vmem:[%s1127_s1 + $0x188] sm:$0xff]  ;;  %v38_v13 = vld [vmem:[%s1127_s1 + $0x98] sm:$0xff] }
   0x3   :  { %v19_v5 = vld [vmem:[%s1127_s1] sm:$0xff]  ;;  %v20_v6 = vld [vmem:[%s1127_s1 + $0x8] sm:$0xff]  ;;  %v605_v7 = vpack.c.bf16 %v68_v4, %v67_v2  ;;  %v69_v14 = vld [vmem:[%s1127_s1 + $0x190] sm:$0xff]  ;;  %v577_v16 = vpack.c.bf16 %v38_v13, %v37_v11 }
   0x4   :  { %v575_v8 = vpack.c.bf16 %v20_v6, %v19_v5  ;;  %v51_v9 = vld [vmem:[%s1127_s1 + $0x100] sm:$0xff]  ;;  %v52_v10 = vld [vmem:[%s1127_s1 + $0x108] sm:$0xff]  ;;  %574 = vmatprep.subr.bf16.mxu0 %v573_v3  ;;  %v70_v15 = vld [vmem:[%s1127_s1 + $0x198] sm:$0xff] }
   0x5   :  { %v607_v12 = vpack.c.bf16 %v52_v10, %v51_v9  ;;  %606 = vmatprep.subr.bf16.mxu1 %v605_v7  ;;  %v609_v17 = vpack.c.bf16 %v70_v15, %v69_v14  ;;  %v21_v18 = vld [vmem:[%s1127_s1 + $0x10] sm:$0xff]  ;;  %v22_v19 = vld [vmem:[%s1127_s1 + $0x18] sm:$0xff]  ;;  %v39_v23 = vld [vmem:[%s1127_s1 + $0xa0] sm:$0xff] }
   0x6   :  { %576 = vmatpush3.bf16.msra.mxu0 %v575_v8  ;;  %v53_v20 = vld [vmem:[%s1127_s1 + $0x110] sm:$0xff]  ;;  %v579_v21 = vpack.c.bf16 %v22_v19, %v21_v18  ;;  %v54_v22 = vld [vmem:[%s1127_s1 + $0x118] sm:$0xff]  ;;  %v40_v24 = vld [vmem:[%s1127_s1 + $0xa8] sm:$0xff] }
   0x7   :  { %608 = vmatpush3.bf16.msra.mxu1 %v607_v12  ;;  %578 = vmatprep.subr.bf16.mxu0 %v577_v16  ;;  %v611_v25 = vpack.c.bf16 %v54_v22, %v53_v20  ;;  %v581_v26 = vpack.c.bf16 %v40_v24, %v39_v23  ;;  %v71_v27 = vld [vmem:[%s1127_s1 + $0x1a0] sm:$0xff]  ;;  %v72_v28 = vld [vmem:[%s1127_s1 + $0x1a8] sm:$0xff]  ;;  %v41_v35 = vld [vmem:[%s1127_s1 + $0xb0] sm:$0xff] }
   0x8   :  { %610 = vmatprep.subr.bf16.mxu1 %v609_v17  ;;  %v23_v29 = vld [vmem:[%s1127_s1 + $0x20] sm:$0xff]  ;;  %v613_v30 = vpack.c.bf16 %v72_v28, %v71_v27  ;;  %v24_v31 = vld [vmem:[%s1127_s1 + $0x28] sm:$0xff]  ;;  %v42_v36 = vld [vmem:[%s1127_s1 + $0xb8] sm:$0xff] }
   0x9   :  { %v55_v32 = vld [vmem:[%s1127_s1 + $0x120] sm:$0xff]  ;;  %v56_v33 = vld [vmem:[%s1127_s1 + $0x128] sm:$0xff]  ;;  %v583_v34 = vpack.c.bf16 %v24_v31, %v23_v29  ;;  %v73_v37 = vld [vmem:[%s1127_s1 + $0x1b0] sm:$0xff]  ;;  %v585_v39 = vpack.c.bf16 %v42_v36, %v41_v35 }
   0xa   :  { %580 = vmatpush3.bf16.msra.mxu0 %v579_v21  ;;  %v615_v38 = vpack.c.bf16 %v56_v33, %v55_v32  ;;  %v74_v40 = vld [vmem:[%s1127_s1 + $0x1b8] sm:$0xff]  ;;  %v25_v41 = vld [vmem:[%s1127_s1 + $0x30] sm:$0xff]  ;;  %v43_v46 = vld [vmem:[%s1127_s1 + $0xc0] sm:$0xff] }
   0xb   :  { %612 = vmatpush3.bf16.msra.mxu1 %v611_v25  ;;  %582 = vmatprep.subr.bf16.mxu0 %v581_v26  ;;  %v26_v42 = vld [vmem:[%s1127_s1 + $0x38] sm:$0xff]  ;;  %v617_v43 = vpack.c.bf16 %v74_v40, %v73_v37  ;;  %v57_v44 = vld [vmem:[%s1127_s1 + $0x130] sm:$0xff]  ;;  %v44_v47 = vld [vmem:[%s1127_s1 + $0xc8] sm:$0xff] }
   0xc   :  { %614 = vmatprep.subr.bf16.mxu1 %v613_v30  ;;  %v58_v45 = vld [vmem:[%s1127_s1 + $0x138] sm:$0xff]  ;;  %v75_v48 = vld [vmem:[%s1127_s1 + $0x1c0] sm:$0xff]  ;;  %v76_v49 = vld [vmem:[%s1127_s1 + $0x1c8] sm:$0xff]  ;;  %v587_v50 = vpack.c.bf16 %v26_v42, %v25_v41  ;;  %v589_v52 = vpack.c.bf16 %v44_v47, %v43_v46 }
   0xd   :  { %v619_v51 = vpack.c.bf16 %v58_v45, %v57_v44  ;;  %v27_v53 = vld [vmem:[%s1127_s1 + $0x40] sm:$0xff]  ;;  %v28_v54 = vld [vmem:[%s1127_s1 + $0x48] sm:$0xff]  ;;  %v621_v56 = vpack.c.bf16 %v76_v49, %v75_v48  ;;  %v45_v58 = vld [vmem:[%s1127_s1 + $0xd0] sm:$0xff] }
   0xe   :  { %584 = vmatpush3.bf16.msra.mxu0 %v583_v34  ;;  %v59_v55 = vld [vmem:[%s1127_s1 + $0x140] sm:$0xff]  ;;  %v60_v57 = vld [vmem:[%s1127_s1 + $0x148] sm:$0xff]  ;;  %v46_v59 = vld [vmem:[%s1127_s1 + $0xd8] sm:$0xff]  ;;  %v591_v62 = vpack.c.bf16 %v28_v54, %v27_v53 }
   0xf   :  { %616 = vmatpush3.bf16.msra.mxu1 %v615_v38  ;;  %586 = vmatprep.subr.bf16.mxu0 %v585_v39  ;;  %v77_v60 = vld [vmem:[%s1127_s1 + $0x1d0] sm:$0xff]  ;;  %v78_v61 = vld [vmem:[%s1127_s1 + $0x1d8] sm:$0xff]  ;;  %v623_v63 = vpack.c.bf16 %v60_v57, %v59_v55  ;;  %v593_v0 = vpack.c.bf16 %v46_v59, %v45_v58  ;;  %v47_v6 = vld [vmem:[%s1127_s1 + $0xe0] sm:$0xff] }
  0x10   :  { %618 = vmatprep.subr.bf16.mxu1 %v617_v43  ;;  %v29_v1 = vld [vmem:[%s1127_s1 + $0x50] sm:$0xff]  ;;  %v30_v2 = vld [vmem:[%s1127_s1 + $0x58] sm:$0xff]  ;;  %v625_v4 = vpack.c.bf16 %v78_v61, %v77_v60  ;;  %v48_v7 = vld [vmem:[%s1127_s1 + $0xe8] sm:$0xff] }
  0x11   :  { %v61_v3 = vld [vmem:[%s1127_s1 + $0x150] sm:$0xff]  ;;  %v62_v5 = vld [vmem:[%s1127_s1 + $0x158] sm:$0xff]  ;;  %v79_v8 = vld [vmem:[%s1127_s1 + $0x1e0] sm:$0xff]  ;;  %v595_v10 = vpack.c.bf16 %v30_v2, %v29_v1  ;;  %v597_v14 = vpack.c.bf16 %v48_v7, %v47_v6 }
  0x12   :  { %588 = vmatpush3.bf16.msra.mxu0 %v587_v50  ;;  %v80_v9 = vld [vmem:[%s1127_s1 + $0x1e8] sm:$0xff]  ;;  %v31_v11 = vld [vmem:[%s1127_s1 + $0x60] sm:$0xff]  ;;  %v627_v13 = vpack.c.bf16 %v62_v5, %v61_v3  ;;  %v14_v17 = vld [vmem:[%s1128_s0 + $0x18] sm:$0xff] }
  0x13   :  { %620 = vmatpush3.bf16.msra.mxu1 %v619_v51  ;;  %590 = vmatprep.subr.bf16.mxu0 %v589_v52  ;;  %v32_v12 = vld [vmem:[%s1127_s1 + $0x68] sm:$0xff]  ;;  %v63_v15 = vld [vmem:[%s1127_s1 + $0x160] sm:$0xff]  ;;  %v629_v18 = vpack.c.bf16 %v80_v9, %v79_v8  ;;  %v49_v20 = vld [vmem:[%s1127_s1 + $0xf0] sm:$0xff] }
  0x14   :  { %622 = vmatprep.subr.bf16.mxu1 %v621_v56  ;;  %v12_v16 = vld [vmem:[%s1128_s0 + $0x8] sm:$0xff]  ;;  %v50_v21 = vld [vmem:[%s1127_s1 + $0xf8] sm:$0xff]  ;;  %v81_v22 = vld [vmem:[%s1127_s1 + $0x1f0] sm:$0xff]  ;;  %281 = vmatprep.mubr.f32.mxu1 %v14_v17  ;;  %v599_v24 = vpack.c.bf16 %v32_v12, %v31_v11 }
  0x15   :  { %v64_v19 = vld [vmem:[%s1127_s1 + $0x168] sm:$0xff]  ;;  %211 = vmatprep.mubr.f32.mxu0 %v12_v16  ;;  %v82_v23 = vld [vmem:[%s1127_s1 + $0x1f8] sm:$0xff]  ;;  %v601_v26 = vpack.c.bf16 %v50_v21, %v49_v20  ;;  %v33_v27 = vld [vmem:[%s1127_s1 + $0x70] sm:$0xff] }
  0x16   :  { %592 = vmatpush3.bf16.msra.mxu0 %v591_v62  ;;  %v631_v25 = vpack.c.bf16 %v64_v19, %v63_v15  ;;  %v34_v28 = vld [vmem:[%s1127_s1 + $0x78] sm:$0xff]  ;;  %v65_v29 = vld [vmem:[%s1127_s1 + $0x170] sm:$0xff]  ;;  %v633_v30 = vpack.c.bf16 %v82_v23, %v81_v22  ;;  %v99_v32 = vld [vmem:[%s1127_s1 + $0x280] sm:$0xff] }
  0x17   :  { %624 = vmatpush3.bf16.msra.mxu1 %v623_v63  ;;  %594 = vmatprep.subr.bf16.mxu0 %v593_v0  ;;  %v66_v31 = vld [vmem:[%s1127_s1 + $0x178] sm:$0xff]  ;;  %v100_v33 = vld [vmem:[%s1127_s1 + $0x288] sm:$0xff]  ;;  %v131_v34 = vld [vmem:[%s1127_s1 + $0x380] sm:$0xff]  ;;  %v603_v36 = vpack.c.bf16 %v34_v28, %v33_v27 }
  0x18   :  { %626 = vmatprep.subr.bf16.mxu1 %v625_v4  ;;  %v132_v35 = vld [vmem:[%s1127_s1 + $0x388] sm:$0xff]  ;;  %v635_v37 = vpack.c.bf16 %v66_v31, %v65_v29  ;;  %v637_v38 = vpack.c.bf16 %v100_v33, %v99_v32  ;;  %v83_v39 = vld [vmem:[%s1127_s1 + $0x200] sm:$0xff]  ;;  %v101_v44 = vld [vmem:[%s1127_s1 + $0x290] sm:$0xff] }
  0x19   :  { %v84_v40 = vld [vmem:[%s1127_s1 + $0x208] sm:$0xff]  ;;  %v115_v41 = vld [vmem:[%s1127_s1 + $0x300] sm:$0xff]  ;;  %v669_v42 = vpack.c.bf16 %v132_v35, %v131_v34  ;;  %v102_v45 = vld [vmem:[%s1127_s1 + $0x298] sm:$0xff] }
  0x1a   :  { %596 = vmatpush3.bf16.msra.mxu0 %v595_v10  ;;  %v116_v43 = vld [vmem:[%s1127_s1 + $0x308] sm:$0xff]  ;;  %v133_v46 = vld [vmem:[%s1127_s1 + $0x390] sm:$0xff]  ;;  %v134_v47 = vld [vmem:[%s1127_s1 + $0x398] sm:$0xff]  ;;  %v639_v50 = vpack.c.bf16 %v84_v40, %v83_v39  ;;  %v641_v52 = vpack.c.bf16 %v102_v45, %v101_v44 }
  0x1b   :  { %628 = vmatpush3.bf16.msra.mxu1 %v627_v13  ;;  %598 = vmatprep.subr.bf16.mxu0 %v597_v14  ;;  %v11_v48 = vld [vmem:[%s1128_s0] sm:$0xff]  ;;  %v13_v49 = vld [vmem:[%s1128_s0 + $0x10] sm:$0xff]  ;;  %v671_v51 = vpack.c.bf16 %v116_v43, %v115_v41  ;;  %v86_v54 = vld [vmem:[%s1127_s1 + $0x218] sm:$0xff]  ;;  %v673_v56 = vpack.c.bf16 %v134_v47, %v133_v46 }
  0x1c   :  { %630 = vmatprep.subr.bf16.mxu1 %v629_v18  ;;  %v85_v53 = vld [vmem:[%s1127_s1 + $0x210] sm:$0xff]  ;;  %v118_v57 = vld [vmem:[%s1127_s1 + $0x318] sm:$0xff]  ;;  %v103_v58 = vld [vmem:[%s1127_s1 + $0x2a0] sm:$0xff] }
  0x1d   :  { %v117_v55 = vld [vmem:[%s1127_s1 + $0x310] sm:$0xff]  ;;  %v104_v59 = vld [vmem:[%s1127_s1 + $0x2a8] sm:$0xff]  ;;  %v135_v60 = vld [vmem:[%s1127_s1 + $0x3a0] sm:$0xff]  ;;  %v643_v62 = vpack.c.bf16 %v86_v54, %v85_v53 }
  0x1e   :  { %600 = vmatpush3.bf16.msra.mxu0 %v599_v24  ;;  %v136_v61 = vld [vmem:[%s1127_s1 + $0x3a8] sm:$0xff]  ;;  %v675_v63 = vpack.c.bf16 %v118_v57, %v117_v55  ;;  %v645_v0 = vpack.c.bf16 %v104_v59, %v103_v58  ;;  %v87_v1 = vld [vmem:[%s1127_s1 + $0x220] sm:$0xff]  ;;  %v105_v6 = vld [vmem:[%s1127_s1 + $0x2b0] sm:$0xff] }
  0x1f   :  { %632 = vmatpush3.bf16.msra.mxu1 %v631_v25  ;;  %602 = vmatprep.subr.bf16.mxu0 %v601_v26  ;;  %v88_v2 = vld [vmem:[%s1127_s1 + $0x228] sm:$0xff]  ;;  %v119_v3 = vld [vmem:[%s1127_s1 + $0x320] sm:$0xff]  ;;  %v677_v4 = vpack.c.bf16 %v136_v61, %v135_v60  ;;  %v106_v7 = vld [vmem:[%s1127_s1 + $0x2b8] sm:$0xff] }
  0x20   :  { %634 = vmatprep.subr.bf16.mxu1 %v633_v30  ;;  %v120_v5 = vld [vmem:[%s1127_s1 + $0x328] sm:$0xff]  ;;  %v137_v8 = vld [vmem:[%s1127_s1 + $0x3b0] sm:$0xff]  ;;  %v138_v9 = vld [vmem:[%s1127_s1 + $0x3b8] sm:$0xff]  ;;  %v647_v10 = vpack.c.bf16 %v88_v2, %v87_v1  ;;  %v649_v12 = vpack.c.bf16 %v106_v7, %v105_v6 }
  0x21   :  { %v679_v11 = vpack.c.bf16 %v120_v5, %v119_v3  ;;  %v89_v13 = vld [vmem:[%s1127_s1 + $0x230] sm:$0xff]  ;;  %v90_v14 = vld [vmem:[%s1127_s1 + $0x238] sm:$0xff]  ;;  %v681_v16 = vpack.c.bf16 %v138_v9, %v137_v8  ;;  %v107_v18 = vld [vmem:[%s1127_s1 + $0x2c0] sm:$0xff] }
  0x22   :  { %604 = vmatpush3.bf16.msra.mxu0 %v603_v36  ;;  %v121_v15 = vld [vmem:[%s1127_s1 + $0x330] sm:$0xff]  ;;  %v122_v17 = vld [vmem:[%s1127_s1 + $0x338] sm:$0xff]  ;;  %v108_v19 = vld [vmem:[%s1127_s1 + $0x2c8] sm:$0xff]  ;;  %v651_v22 = vpack.c.bf16 %v90_v14, %v89_v13 }
  0x23   :  { %636 = vmatpush3.bf16.msra.mxu1 %v635_v37  ;;  %638 = vmatprep.subr.bf16.mxu0 %v637_v38  ;;  %v139_v20 = vld [vmem:[%s1127_s1 + $0x3c0] sm:$0xff]  ;;  %v140_v21 = vld [vmem:[%s1127_s1 + $0x3c8] sm:$0xff]  ;;  %v18_v24 = vld [vmem:[%s1128_s0 + $0x38] sm:$0xff]  ;;  %v683_v25 = vpack.c.bf16 %v122_v17, %v121_v15  ;;  %v653_v26 = vpack.c.bf16 %v108_v19, %v107_v18 }
  0x24   :  { %670 = vmatprep.subr.bf16.mxu1 %v669_v42  ;;  %v16_v23 = vld [vmem:[%s1128_s0 + $0x28] sm:$0xff]  ;;  %v91_v27 = vld [vmem:[%s1127_s1 + $0x240] sm:$0xff]  ;;  %v685_v30 = vpack.c.bf16 %v140_v21, %v139_v20  ;;  %v109_v32 = vld [vmem:[%s1127_s1 + $0x2d0] sm:$0xff] }
  0x25   :  { %212 = vmatmul.mubr.f32.vlgmr.msra.gmra.mrb[0].mxu0 %v11_v48  ;;  %v92_v28 = vld [vmem:[%s1127_s1 + $0x248] sm:$0xff]  ;;  %v123_v29 = vld [vmem:[%s1127_s1 + $0x340] sm:$0xff]  ;;  %v110_v33 = vld [vmem:[%s1127_s1 + $0x2d8] sm:$0xff] }
  0x26   :  { %282 = vmatmul.mubr.f32.vlgmr.msra.gmra.mrb[0].mxu1 %v13_v49  ;;  %640 = vmatpush3.bf16.msra.mxu0 %v639_v50  ;;  %v124_v31 = vld [vmem:[%s1127_s1 + $0x348] sm:$0xff]  ;;  %v141_v34 = vld [vmem:[%s1127_s1 + $0x3d0] sm:$0xff]  ;;  %v142_v35 = vld [vmem:[%s1127_s1 + $0x3d8] sm:$0xff]  ;;  %v655_v36 = vpack.c.bf16 %v92_v28, %v91_v27  ;;  %v657_v38 = vpack.c.bf16 %v110_v33, %v109_v32 }
  0x27   :  { %672 = vmatpush3.bf16.msra.mxu1 %v671_v51  ;;  %642 = vmatprep.subr.bf16.mxu0 %v641_v52  ;;  %v687_v37 = vpack.c.bf16 %v124_v31, %v123_v29  ;;  %v93_v39 = vld [vmem:[%s1127_s1 + $0x250] sm:$0xff]  ;;  %v94_v40 = vld [vmem:[%s1127_s1 + $0x258] sm:$0xff]  ;;  %v689_v42 = vpack.c.bf16 %v142_v35, %v141_v34  ;;  %v111_v44 = vld [vmem:[%s1127_s1 + $0x2e0] sm:$0xff] }
  0x28   :  { %674 = vmatprep.subr.bf16.mxu1 %v673_v56  ;;  %351 = vmatprep.mubr.f32.mxu0 %v16_v23  ;;  %v125_v41 = vld [vmem:[%s1127_s1 + $0x350] sm:$0xff]  ;;  %v126_v43 = vld [vmem:[%s1127_s1 + $0x358] sm:$0xff]  ;;  %v112_v45 = vld [vmem:[%s1127_s1 + $0x2e8] sm:$0xff]  ;;  %v659_v48 = vpack.c.bf16 %v94_v40, %v93_v39 }
  0x29   :  { %421 = vmatprep.mubr.f32.mxu1 %v18_v24  ;;  %v143_v46 = vld [vmem:[%s1127_s1 + $0x3e0] sm:$0xff]  ;;  %v144_v47 = vld [vmem:[%s1127_s1 + $0x3e8] sm:$0xff]  ;;  %v691_v49 = vpack.c.bf16 %v126_v43, %v125_v41  ;;  %v661_v50 = vpack.c.bf16 %v112_v45, %v111_v44  ;;  %v113_v56 = vld [vmem:[%s1127_s1 + $0x2f0] sm:$0xff] }
  0x2a   :  { %644 = vmatpush3.bf16.msra.mxu0 %v643_v62  ;;  %v95_v51 = vld [vmem:[%s1127_s1 + $0x260] sm:$0xff]  ;;  %v96_v52 = vld [vmem:[%s1127_s1 + $0x268] sm:$0xff]  ;;  %v693_v54 = vpack.c.bf16 %v144_v47, %v143_v46  ;;  %v114_v57 = vld [vmem:[%s1127_s1 + $0x2f8] sm:$0xff] }
  0x2b   :  { %676 = vmatpush3.bf16.msra.mxu1 %v675_v63  ;;  %646 = vmatprep.subr.bf16.mxu0 %v645_v0  ;;  %v127_v53 = vld [vmem:[%s1127_s1 + $0x360] sm:$0xff]  ;;  %v128_v55 = vld [vmem:[%s1127_s1 + $0x368] sm:$0xff]  ;;  %v145_v58 = vld [vmem:[%s1127_s1 + $0x3f0] sm:$0xff]  ;;  %v663_v60 = vpack.c.bf16 %v96_v52, %v95_v51  ;;  %v665_v62 = vpack.c.bf16 %v114_v57, %v113_v56 }
  0x2c   :  { %678 = vmatprep.subr.bf16.mxu1 %v677_v4  ;;  %v146_v59 = vld [vmem:[%s1127_s1 + $0x3f8] sm:$0xff]  ;;  %v695_v61 = vpack.c.bf16 %v128_v55, %v127_v53  ;;  %v97_v63 = vld [vmem:[%s1127_s1 + $0x270] sm:$0xff]  ;;  %v15_v6 = vld [vmem:[%s1128_s0 + $0x20] sm:$0xff] }
  0x2d   :  { %v98_v0 = vld [vmem:[%s1127_s1 + $0x278] sm:$0xff]  ;;  %v697_v1 = vpack.c.bf16 %v146_v59, %v145_v58  ;;  %v129_v2 = vld [vmem:[%s1127_s1 + $0x370] sm:$0xff] }
  0x2e   :  { %648 = vmatpush3.bf16.msra.mxu0 %v647_v10  ;;  %v130_v3 = vld [vmem:[%s1127_s1 + $0x378] sm:$0xff]  ;;  %v667_v4 = vpack.c.bf16 %v98_v0, %v97_v63  ;;  %v17_v7 = vld [vmem:[%s1128_s0 + $0x30] sm:$0xff] }
  0x2f   :  { %680 = vmatpush3.bf16.msra.mxu1 %v679_v11  ;;  %650 = vmatprep.subr.bf16.mxu0 %v649_v12  ;;  %v699_v5 = vpack.c.bf16 %v130_v3, %v129_v2 }
  0x30   :  { %682 = vmatprep.subr.bf16.mxu1 %v681_v16 }
  0x32   :  { %652 = vmatpush3.bf16.msra.mxu0 %v651_v22 }
  0x33   :  { %684 = vmatpush3.bf16.msra.mxu1 %v683_v25  ;;  %654 = vmatprep.subr.bf16.mxu0 %v653_v26 }
  0x34   :  { %686 = vmatprep.subr.bf16.mxu1 %v685_v30 }
  0x36   :  { %656 = vmatpush3.bf16.msra.mxu0 %v655_v36 }
  0x37   :  { %688 = vmatpush3.bf16.msra.mxu1 %v687_v37  ;;  %658 = vmatprep.subr.bf16.mxu0 %v657_v38 }
  0x38   :  { %690 = vmatprep.subr.bf16.mxu1 %v689_v42 }
  0x3a   :  { %660 = vmatpush3.bf16.msra.mxu0 %v659_v48 }
  0x3b   :  { %692 = vmatpush3.bf16.msra.mxu1 %v691_v49  ;;  %662 = vmatprep.subr.bf16.mxu0 %v661_v50 }
  0x3c   :  { %694 = vmatprep.subr.bf16.mxu1 %v693_v54 }
  0x3e   :  { %664 = vmatpush3.bf16.msra.mxu0 %v663_v60 }
  0x3f   :  { %696 = vmatpush3.bf16.msra.mxu1 %v695_v61  ;;  %666 = vmatprep.subr.bf16.mxu0 %v665_v62 }
  0x40   :  { %698 = vmatprep.subr.bf16.mxu1 %v697_v1 }
  0x42   :  { %668 = vmatpush3.bf16.msra.mxu0 %v667_v4 }
  0x43   :  { %700 = vmatpush3.bf16.msra.mxu1 %v699_v5 }
  0x45   :  { %352 = vmatmul.mubr.f32.vlgmr.msra.gmra.mrb[2].mxu0 %v15_v6 }
  0x46   :  { %422 = vmatmul.mubr.f32.vlgmr.msra.gmra.mrb[2].mxu1 %v17_v7 }
  0xf8   :  { %v465_v8 = vpop.f32.mrb[0].mxu0 }
  0xf9   :  { %v500_v9 = vpop.f32.mrb[0].mxu1  ;;  %v466_v10 = vpop.f32.mrb[1].mxu0 }
  0xfa   :  { %v467_v11 = vadd.f32 %v466_v10, %v465_v8  ;;  %v501_v12 = vpop.f32.mrb[1].mxu1 }
  0xfb   :  { %v502_v13 = vadd.f32 %v501_v12, %v500_v9 }
  0xfd   :  { %v284_v14 = vadd.f32 %v502_v13, %v467_v11 }
 0x118   :  { %v535_v15 = vpop.f32.mrb[2].mxu0 }
 0x119   :  { %v536_v16 = vpop.f32.mrb[3].mxu0  ;;  %v570_v17 = vpop.f32.mrb[2].mxu1 }
 0x11a   :  { %v537_v18 = vadd.f32 %v536_v16, %v535_v15  ;;  %v571_v19 = vpop.f32.mrb[3].mxu1 }
 0x11b   :  { %v572_v20 = vadd.f32 %v571_v19, %v570_v17 }
 0x11c   :  { %v354_v21 = vadd.f32 %v537_v18, %v284_v14 }
 0x11e   :  { %v424_v22 = vadd.f32 %v572_v20, %v354_v21 }
 0x120   :  { %428 = vst.msk [vmem:[%s1129_s2] sm:$0xff] %vm427_vm0, %v424_v22 }

</bundles_post_ra>
